<compile_context>
chip_gen: v7x
topology: tpu7x:2x2x1
jax: 0.10.0
libtpu: 0.0.40
codegen_flags: <defaults>
</compile_context>

<pallas_src>
import functools
import math

import numpy as np

import jax
import jax.numpy as jnp
from jax.experimental import pallas as pl
from jax.experimental.pallas import tpu as pltpu

LANE = 128  # all layer widths are <= 128 for this model; padded to one lane tile


def _pad8(d):
    return ((d + 7) // 8) * 8


# ----------------------------------------------------------------------------
# Kernel
# ----------------------------------------------------------------------------
def _gae_fused_kernel(x_ref, p_ref, out_ref, *, layer_meta, final_meta,
                      num_encoder_layers, graphs_per_block, nodes_per_graph,
                      eps):
    """Fused GAE forward on one block of `graphs_per_block` graphs.

    x_ref   : (graphs_per_block * N, in_lanes)      activations block
    p_ref   : (slab_rows, 128)                      packed parameter slab
    out_ref : (graphs_per_block * N, 256)           lanes [0,128)=recon, [128,256)=z
    """
    gb = graphs_per_block
    n = nodes_per_graph
    rows = gb * n
    inv_n = 1.0 / n  # per-graph batch size (BatchNorm1d batch statistics)

    h = x_ref[...].astype(jnp.float32)

    if gb > 1:
        # Graph-membership selector matrices (built from 2-D iota, no int div,
        # no reshapes): per-graph sums become tiny MXU matmuls, and the
        # per-graph scale/shift are broadcast back to rows with another matmul.
        r = jax.lax.broadcasted_iota(jnp.int32, (rows, gb), 0)   # row index
        c = jax.lax.broadcasted_iota(jnp.int32, (rows, gb), 1)   # graph index
        seg = ((r >= c * n) & (r < (c + 1) * n)).astype(jnp.float32)     # (rows, gb)
        rt = jax.lax.broadcasted_iota(jnp.int32, (gb, rows), 0)  # graph index
        ct = jax.lax.broadcasted_iota(jnp.int32, (gb, rows), 1)  # row index
        segT = ((ct >= rt * n) & (ct < (rt + 1) * n)).astype(jnp.float32)  # (gb, rows)

    # Unrolled at trace time: each iteration is Linear -> BN(batch stats) -> ReLU.
    for i, (w_off, w_rows, v_off) in enumerate(layer_meta):
        w = p_ref[w_off:w_off + w_rows, :]          # (w_rows, 128), zero padded
        b = p_ref[v_off:v_off + 1, :]               # (1, 128)
        gamma = p_ref[v_off + 1:v_off + 2, :]       # (1, 128)  (zero in padded lanes)
        beta = p_ref[v_off + 2:v_off + 3, :]        # (1, 128)

        y = jnp.dot(h, w, preferred_element_type=jnp.float32) + b

        # Single-pass batch statistics (biased variance), per graph.
        if gb == 1:
            s = jnp.sum(y, axis=0, keepdims=True)
            sq = jnp.sum(y * y, axis=0, keepdims=True)
            mean = s * inv_n
            var = sq * inv_n - mean * mean
            scale = gamma * jax.lax.rsqrt(var + eps)     # rsqrt -> EUP slot
            shift = beta - mean * scale
            h = jnp.maximum(y * scale + shift, 0.0)      # normalize + ReLU
        else:
            s = jnp.dot(segT, y, preferred_element_type=jnp.float32)       # (gb, 128)
            sq = jnp.dot(segT, y * y, preferred_element_type=jnp.float32)  # (gb, 128)
            mean = s * inv_n
            var = sq * inv_n - mean * mean
            scale = gamma * jax.lax.rsqrt(var + eps)                       # (gb, 128)
            shift = beta - mean * scale                                    # (gb, 128)
            scale_r = jnp.dot(seg, scale, preferred_element_type=jnp.float32)  # (rows,128)
            shift_r = jnp.dot(seg, shift, preferred_element_type=jnp.float32)
            h = jnp.maximum(y * scale_r + shift_r, 0.0)

        if i == num_encoder_layers - 1:
            # Latent code z = encoder output; full 128-lane aligned store.
            out_ref[:, LANE:2 * LANE] = h.astype(out_ref.dtype)

    # Final plain Linear (no BN, no activation).
    wf_off, wf_rows, vf_off = final_meta
    recon = (jnp.dot(h, p_ref[wf_off:wf_off + wf_rows, :],
                     preferred_element_type=jnp.float32)
             + p_ref[vf_off:vf_off + 1, :])
    out_ref[:, 0:LANE] = recon.astype(out_ref.dtype)


# ----------------------------------------------------------------------------
# One-time parameter packing (feedback items 1 & 4)
# ----------------------------------------------------------------------------
def pack_gae_params(params, input_dim):
    """Pack all weights/biases/BN params into a single [rows, 128] f32 slab.

    Each Linear weight occupies a zero-padded (rows_pad8_or_128, 128) block
    (so activations can carry a full 128-lane padded feature axis); each
    layer's (bias, gamma, beta) share one 8-row block (rows 0,1,2).
    Padded lanes/rows are zero, which keeps the padded activation lanes
    exactly zero through the whole chain.
    """
    enc = params["encoder"]
    dec = params["decoder"]
    fin = params["decoder_final"]
    bn_layers = enc + dec

    all_dims = [input_dim] + [l["w"].shape[1] for l in bn_layers] + [fin["w"].shape[1]]
    assert max(all_dims) <= LANE, "feature widths > 128 not supported"
    # TODO(synk): support feature widths > 128 lanes by tiling the lane axis.

    in0_rows = _pad8(input_dim)
    blocks = []
    offset = 0

    def add_block(arr):
        nonlocal offset
        off = offset
        blocks.append(arr)
        offset += arr.shape[0]
        return off

    layer_meta = []
    for i, layer in enumerate(bn_layers):
        w = np.asarray(layer["w"], np.float32)
        in_dim, out_dim = w.shape
        w_rows = in0_rows if i == 0 else LANE
        wb = np.zeros((w_rows, LANE), np.float32)
        wb[:in_dim, :out_dim] = w
        w_off = add_block(wb)
        vb = np.zeros((8, LANE), np.float32)
        vb[0, :out_dim] = np.asarray(layer["b"], np.float32)
        vb[1, :out_dim] = np.asarray(layer["gamma"], np.float32)
        vb[2, :out_dim] = np.asarray(layer["beta"], np.float32)
        v_off = add_block(vb)
        layer_meta.append((w_off, w_rows, v_off))

    wf = np.asarray(fin["w"], np.float32)
    fin_in, fin_out = wf.shape
    wb = np.zeros((LANE, LANE), np.float32)
    wb[:fin_in, :fin_out] = wf
    wf_off = add_block(wb)
    vb = np.zeros((8, LANE), np.float32)
    vb[0, :fin_out] = np.asarray(fin["b"], np.float32)
    vf_off = add_block(vb)

    slab = jnp.asarray(np.concatenate(blocks, axis=0))
    meta = dict(
        layer_meta=tuple(layer_meta),
        final_meta=(wf_off, LANE, vf_off),
        num_encoder_layers=len(enc),
        z_dim=enc[-1]["w"].shape[1],
        input_dim=input_dim,
    )
    return slab, meta


# ----------------------------------------------------------------------------
# Forward wrappers
# ----------------------------------------------------------------------------
def gae_forward_batched(slab, meta, g_batched, graphs_per_block=None, eps=1e-5):
    """Batched forward over G graphs: g_batched (G, N, input_dim) -> (recon, z)."""
    G, N, input_dim = g_batched.shape
    assert input_dim == meta["input_dim"]
    if graphs_per_block is None:
        graphs_per_block = math.gcd(G, 16)
    gb = graphs_per_block
    assert G % gb == 0, "graphs_per_block must divide the number of graphs"

    in_lane = _pad8(input_dim)
    x2 = g_batched.reshape(G * N, input_dim).astype(jnp.float32)
    if in_lane != input_dim:
        x2 = jnp.pad(x2, ((0, 0), (0, in_lane - input_dim)))

    rows_per_block = gb * N
    kernel = functools.partial(
        _gae_fused_kernel,
        layer_meta=meta["layer_meta"],
        final_meta=meta["final_meta"],
        num_encoder_layers=meta["num_encoder_layers"],
        graphs_per_block=gb,
        nodes_per_graph=N,
        eps=eps,
    )
    out = pl.pallas_call(
        kernel,
        out_shape=jax.ShapeDtypeStruct((G * N, 2 * LANE), jnp.float32),
        grid=(G // gb,),
        in_specs=[
            pl.BlockSpec((rows_per_block, in_lane), lambda i: (i, 0)),
            pl.BlockSpec(slab.shape, lambda i: (0, 0)),   # resident param slab
        ],
        out_specs=pl.BlockSpec((rows_per_block, 2 * LANE), lambda i: (i, 0)),
        compiler_params=pltpu.CompilerParams(
            dimension_semantics=("parallel",)),   # second TC on v7x
    )(x2, slab)

    recon = out[:, :input_dim].reshape(G, N, input_dim)
    z = out[:, LANE:LANE + meta["z_dim"]].reshape(G, N, meta["z_dim"])
    return recon, z


def gae_forward(slab, meta, g, eps=1e-5):
    """Single-graph forward(g) -> (recon, z), one fused pallas_call."""
    recon, z = gae_forward_batched(slab, meta, g[None], graphs_per_block=1, eps=eps)
    return recon[0], z[0]


# ----------------------------------------------------------------------------
# Parameter init + pure-JAX reference
# ----------------------------------------------------------------------------
def init_gae_params(key, input_dim, layer_sizes):
    """Deterministic parameter init mirroring the module's layer structure."""
    def make_linear(k, in_dim, out_dim, with_bn=True):
        kw, kb = jax.random.split(k)
        bound = 1.0 / jnp.sqrt(in_dim)
        w = jax.random.uniform(kw, (in_dim, out_dim), jnp.float32, -bound, bound)
        b = jax.random.uniform(kb, (out_dim,), jnp.float32, -bound, bound)
        p = {"w": w, "b": b}
        if with_bn:
            p["gamma"] = jnp.ones((out_dim,), jnp.float32)
            p["beta"] = jnp.zeros((out_dim,), jnp.float32)
        return p

    params = {"encoder": [], "decoder": []}
    enc_dims = [input_dim] + list(layer_sizes)
    for in_dim, out_dim in zip(enc_dims[:-1], enc_dims[1:]):
        key, sub = jax.random.split(key)
        params["encoder"].append(make_linear(sub, in_dim, out_dim))
    dec_dims = list(layer_sizes)[::-1]
    for in_dim, out_dim in zip(dec_dims[:-1], dec_dims[1:]):
        key, sub = jax.random.split(key)
        params["decoder"].append(make_linear(sub, in_dim, out_dim))
    key, sub = jax.random.split(key)
    params["decoder_final"] = make_linear(sub, dec_dims[-1], input_dim, with_bn=False)
    return params


def gae_forward_ref(params, g, eps=1e-5):
    """Pure-JAX reference for correctness checking (single graph)."""
    def block(x, layer, bn, relu):
        y = x @ layer["w"] + layer["b"]
        if bn:
            mean = jnp.mean(y, axis=0, keepdims=True)
            var = jnp.mean((y - mean) ** 2, axis=0, keepdims=True)
            y = (y - mean) / jnp.sqrt(var + eps) * layer["gamma"] + layer["beta"]
        if relu:
            y = jnp.maximum(y, 0.0)
        return y

    z = g
    for layer in params["encoder"]:
        z = block(z, layer, True, True)
    h = z
    for layer in params["decoder"]:
        h = block(h, layer, True, True)
    recon = block(h, params["decoder_final"], False, False)
    return recon, z


# ----------------------------------------------------------------------------
if __name__ == "__main__":
    # GAE(input_dim=32, layer_sizes="[16, 8]", enc_type="linear", dropout=0.0)
    INPUT_DIM = 32
    LAYER_SIZES = [16, 8]
    N = 8  # nodes per graph

    key = jax.random.PRNGKey(0)
    key, pkey, xkey, bkey = jax.random.split(key, 4)
    params = init_gae_params(pkey, INPUT_DIM, LAYER_SIZES)

    # One-time parameter packing (out of the hot path).
    slab, meta = pack_gae_params(params, INPUT_DIM)

    # --- single graph (matches GAE.forward(g)) ------------------------------
    g = jax.random.normal(xkey, (N, INPUT_DIM), jnp.float32)
    fwd = jax.jit(lambda s, x: gae_forward(s, meta, x))
    recon, z = fwd(slab, g)
    recon = jax.block_until_ready(recon)
    z = jax.block_until_ready(z)

    recon_ref, z_ref = gae_forward_ref(params, g)
    assert recon.shape == (N, INPUT_DIM) and z.shape == (N, LAYER_SIZES[-1])
    assert jnp.allclose(recon, recon_ref, atol=1e-4, rtol=1e-4)
    assert jnp.allclose(z, z_ref, atol=1e-4, rtol=1e-4)

    # --- batched: many graphs per call, per-graph BatchNorm semantics -------
    G = 8
    gs = jax.random.normal(bkey, (G, N, INPUT_DIM), jnp.float32)
    fwd_b = jax.jit(lambda s, x: gae_forward_batched(s, meta, x, graphs_per_block=4))
    recon_b, z_b = fwd_b(slab, gs)
    recon_b = jax.block_until_ready(recon_b)
    z_b = jax.block_until_ready(z_b)

    recon_bref, z_bref = jax.vmap(lambda x: gae_forward_ref(params, x))(gs)
    assert recon_b.shape == (G, N, INPUT_DIM) and z_b.shape == (G, N, LAYER_SIZES[-1])
    assert jnp.allclose(recon_b, recon_bref, atol=1e-4, rtol=1e-4)
    assert jnp.allclose(z_b, z_bref, atol=1e-4, rtol=1e-4)

    print("KERNEL_OK")
</pallas_src>

<mosaic_0001>
module attributes {stable_mosaic.version = 11 : i64} {
  func.func @_gae_fused_kernel(%arg0: i32, %arg1: memref<8x32xf32, #tpu.memory_space<vmem>>, %arg2: memref<448x128xf32, #tpu.memory_space<vmem>>, %arg3: memref<8x256xf32, #tpu.memory_space<vmem>>) attributes {dimension_semantics = [#tpu.dimension_semantics<parallel>], iteration_bounds = array<i64: 1>, scalar_prefetch = 0 : i64, scratch_operands = 0 : i64, tpu.core_type = #tpu.core_type<tc>, window_params = [{transform_indices = @transform_0, window_bounds = array<i64: 8, 32>}, {pipeline_mode = #tpu.pipeline_mode<synchronous>, transform_indices = @transform_1, window_bounds = array<i64: 448, 128>}, {transform_indices = @transform_2, window_bounds = array<i64: 8, 256>}]} {
    %c0 = arith.constant 0 : index
    %c0_0 = arith.constant 0 : index
    %0 = vector.load %arg1[%c0, %c0_0] : memref<8x32xf32, #tpu.memory_space<vmem>>, vector<8x32xf32>
    %c0_1 = arith.constant 0 : index
    %c0_2 = arith.constant 0 : index
    %1 = vector.load %arg2[%c0_1, %c0_2] : memref<448x128xf32, #tpu.memory_space<vmem>>, vector<32x128xf32>
    %c32 = arith.constant 32 : index
    %c0_3 = arith.constant 0 : index
    %2 = vector.load %arg2[%c32, %c0_3] : memref<448x128xf32, #tpu.memory_space<vmem>>, vector<1x128xf32>
    %c33 = arith.constant 33 : index
    %c0_4 = arith.constant 0 : index
    %3 = vector.load %arg2[%c33, %c0_4] : memref<448x128xf32, #tpu.memory_space<vmem>>, vector<1x128xf32>
    %c34 = arith.constant 34 : index
    %c0_5 = arith.constant 0 : index
    %4 = vector.load %arg2[%c34, %c0_5] : memref<448x128xf32, #tpu.memory_space<vmem>>, vector<1x128xf32>
    %cst = arith.constant dense<0.000000e+00> : vector<8x128xf32>
    %5 = tpu.matmul %0, %1, %cst {dimension_numbers = #tpu.dot_dimension_numbers<[1], [0], [0], [1], [0, 0, 1, 1], [], []>} : vector<8x32xf32>, vector<32x128xf32>, vector<8x128xf32> -> vector<8x128xf32>
    %6 = vector.broadcast %2 : vector<1x128xf32> to vector<8x128xf32>
    %7 = arith.addf %5, %6 : vector<8x128xf32>
    %cst_6 = arith.constant dense<0.000000e+00> : vector<128xf32>
    %8 = vector.multi_reduction <add>, %7, %cst_6 [0] : vector<8x128xf32> to vector<128xf32>
    %9 = vector.shape_cast %8 : vector<128xf32> to vector<1x128xf32>
    %10 = arith.mulf %7, %7 : vector<8x128xf32>
    %cst_7 = arith.constant dense<0.000000e+00> : vector<128xf32>
    %11 = vector.multi_reduction <add>, %10, %cst_7 [0] : vector<8x128xf32> to vector<128xf32>
    %12 = vector.shape_cast %11 : vector<128xf32> to vector<1x128xf32>
    %cst_8 = arith.constant 1.250000e-01 : f32
    %13 = vector.broadcast %cst_8 : f32 to vector<1x128xf32>
    %14 = arith.mulf %9, %13 : vector<1x128xf32>
    %cst_9 = arith.constant 1.250000e-01 : f32
    %15 = vector.broadcast %cst_9 : f32 to vector<1x128xf32>
    %16 = arith.mulf %12, %15 : vector<1x128xf32>
    %17 = arith.mulf %14, %14 : vector<1x128xf32>
    %18 = arith.subf %16, %17 : vector<1x128xf32>
    %cst_10 = arith.constant 9.99999974E-6 : f32
    %19 = vector.broadcast %cst_10 : f32 to vector<1x128xf32>
    %20 = arith.addf %18, %19 : vector<1x128xf32>
    %21 = math.rsqrt %20 : vector<1x128xf32>
    %22 = arith.mulf %3, %21 : vector<1x128xf32>
    %23 = arith.mulf %14, %22 : vector<1x128xf32>
    %24 = arith.subf %4, %23 : vector<1x128xf32>
    %25 = vector.broadcast %22 : vector<1x128xf32> to vector<8x128xf32>
    %26 = arith.mulf %7, %25 : vector<8x128xf32>
    %27 = vector.broadcast %24 : vector<1x128xf32> to vector<8x128xf32>
    %28 = arith.addf %26, %27 : vector<8x128xf32>
    %cst_11 = arith.constant 0.000000e+00 : f32
    %29 = vector.broadcast %cst_11 : f32 to vector<8x128xf32>
    %30 = arith.maximumf %28, %29 : vector<8x128xf32>
    %c40 = arith.constant 40 : index
    %c0_12 = arith.constant 0 : index
    %31 = vector.load %arg2[%c40, %c0_12] : memref<448x128xf32, #tpu.memory_space<vmem>>, vector<128x128xf32>
    %c168 = arith.constant 168 : index
    %c0_13 = arith.constant 0 : index
    %32 = vector.load %arg2[%c168, %c0_13] : memref<448x128xf32, #tpu.memory_space<vmem>>, vector<1x128xf32>
    %c169 = arith.constant 169 : index
    %c0_14 = arith.constant 0 : index
    %33 = vector.load %arg2[%c169, %c0_14] : memref<448x128xf32, #tpu.memory_space<vmem>>, vector<1x128xf32>
    %c170 = arith.constant 170 : index
    %c0_15 = arith.constant 0 : index
    %34 = vector.load %arg2[%c170, %c0_15] : memref<448x128xf32, #tpu.memory_space<vmem>>, vector<1x128xf32>
    %cst_16 = arith.constant dense<0.000000e+00> : vector<8x128xf32>
    %35 = tpu.matmul %30, %31, %cst_16 {dimension_numbers = #tpu.dot_dimension_numbers<[1], [0], [0], [1], [0, 0, 1, 1], [], []>} : vector<8x128xf32>, vector<128x128xf32>, vector<8x128xf32> -> vector<8x128xf32>
    %36 = vector.broadcast %32 : vector<1x128xf32> to vector<8x128xf32>
    %37 = arith.addf %35, %36 : vector<8x128xf32>
    %cst_17 = arith.constant dense<0.000000e+00> : vector<128xf32>
    %38 = vector.multi_reduction <add>, %37, %cst_17 [0] : vector<8x128xf32> to vector<128xf32>
    %39 = vector.shape_cast %38 : vector<128xf32> to vector<1x128xf32>
    %40 = arith.mulf %37, %37 : vector<8x128xf32>
    %cst_18 = arith.constant dense<0.000000e+00> : vector<128xf32>
    %41 = vector.multi_reduction <add>, %40, %cst_18 [0] : vector<8x128xf32> to vector<128xf32>
    %42 = vector.shape_cast %41 : vector<128xf32> to vector<1x128xf32>
    %cst_19 = arith.constant 1.250000e-01 : f32
    %43 = vector.broadcast %cst_19 : f32 to vector<1x128xf32>
    %44 = arith.mulf %39, %43 : vector<1x128xf32>
    %cst_20 = arith.constant 1.250000e-01 : f32
    %45 = vector.broadcast %cst_20 : f32 to vector<1x128xf32>
    %46 = arith.mulf %42, %45 : vector<1x128xf32>
    %47 = arith.mulf %44, %44 : vector<1x128xf32>
    %48 = arith.subf %46, %47 : vector<1x128xf32>
    %cst_21 = arith.constant 9.99999974E-6 : f32
    %49 = vector.broadcast %cst_21 : f32 to vector<1x128xf32>
    %50 = arith.addf %48, %49 : vector<1x128xf32>
    %51 = math.rsqrt %50 : vector<1x128xf32>
    %52 = arith.mulf %33, %51 : vector<1x128xf32>
    %53 = arith.mulf %44, %52 : vector<1x128xf32>
    %54 = arith.subf %34, %53 : vector<1x128xf32>
    %55 = vector.broadcast %52 : vector<1x128xf32> to vector<8x128xf32>
    %56 = arith.mulf %37, %55 : vector<8x128xf32>
    %57 = vector.broadcast %54 : vector<1x128xf32> to vector<8x128xf32>
    %58 = arith.addf %56, %57 : vector<8x128xf32>
    %cst_22 = arith.constant 0.000000e+00 : f32
    %59 = vector.broadcast %cst_22 : f32 to vector<8x128xf32>
    %60 = arith.maximumf %58, %59 : vector<8x128xf32>
    %c0_23 = arith.constant 0 : index
    %c128 = arith.constant 128 : index
    %61 = vector.load %arg3[%c0_23, %c128] : memref<8x256xf32, #tpu.memory_space<vmem>>, vector<8x128xf32>
    tpu.vector_store %arg3[%c0_23, %c128], %60 {strides = array<i32>} : memref<8x256xf32, #tpu.memory_space<vmem>>, vector<8x128xf32>,
    %c176 = arith.constant 176 : index
    %c0_24 = arith.constant 0 : index
    %62 = vector.load %arg2[%c176, %c0_24] : memref<448x128xf32, #tpu.memory_space<vmem>>, vector<128x128xf32>
    %c304 = arith.constant 304 : index
    %c0_25 = arith.constant 0 : index
    %63 = vector.load %arg2[%c304, %c0_25] : memref<448x128xf32, #tpu.memory_space<vmem>>, vector<1x128xf32>
    %c305 = arith.constant 305 : index
    %c0_26 = arith.constant 0 : index
    %64 = vector.load %arg2[%c305, %c0_26] : memref<448x128xf32, #tpu.memory_space<vmem>>, vector<1x128xf32>
    %c306 = arith.constant 306 : index
    %c0_27 = arith.constant 0 : index
    %65 = vector.load %arg2[%c306, %c0_27] : memref<448x128xf32, #tpu.memory_space<vmem>>, vector<1x128xf32>
    %cst_28 = arith.constant dense<0.000000e+00> : vector<8x128xf32>
    %66 = tpu.matmul %60, %62, %cst_28 {dimension_numbers = #tpu.dot_dimension_numbers<[1], [0], [0], [1], [0, 0, 1, 1], [], []>} : vector<8x128xf32>, vector<128x128xf32>, vector<8x128xf32> -> vector<8x128xf32>
    %67 = vector.broadcast %63 : vector<1x128xf32> to vector<8x128xf32>
    %68 = arith.addf %66, %67 : vector<8x128xf32>
    %cst_29 = arith.constant dense<0.000000e+00> : vector<128xf32>
    %69 = vector.multi_reduction <add>, %68, %cst_29 [0] : vector<8x128xf32> to vector<128xf32>
    %70 = vector.shape_cast %69 : vector<128xf32> to vector<1x128xf32>
    %71 = arith.mulf %68, %68 : vector<8x128xf32>
    %cst_30 = arith.constant dense<0.000000e+00> : vector<128xf32>
    %72 = vector.multi_reduction <add>, %71, %cst_30 [0] : vector<8x128xf32> to vector<128xf32>
    %73 = vector.shape_cast %72 : vector<128xf32> to vector<1x128xf32>
    %cst_31 = arith.constant 1.250000e-01 : f32
    %74 = vector.broadcast %cst_31 : f32 to vector<1x128xf32>
    %75 = arith.mulf %70, %74 : vector<1x128xf32>
    %cst_32 = arith.constant 1.250000e-01 : f32
    %76 = vector.broadcast %cst_32 : f32 to vector<1x128xf32>
    %77 = arith.mulf %73, %76 : vector<1x128xf32>
    %78 = arith.mulf %75, %75 : vector<1x128xf32>
    %79 = arith.subf %77, %78 : vector<1x128xf32>
    %cst_33 = arith.constant 9.99999974E-6 : f32
    %80 = vector.broadcast %cst_33 : f32 to vector<1x128xf32>
    %81 = arith.addf %79, %80 : vector<1x128xf32>
    %82 = math.rsqrt %81 : vector<1x128xf32>
    %83 = arith.mulf %64, %82 : vector<1x128xf32>
    %84 = arith.mulf %75, %83 : vector<1x128xf32>
    %85 = arith.subf %65, %84 : vector<1x128xf32>
    %86 = vector.broadcast %83 : vector<1x128xf32> to vector<8x128xf32>
    %87 = arith.mulf %68, %86 : vector<8x128xf32>
    %88 = vector.broadcast %85 : vector<1x128xf32> to vector<8x128xf32>
    %89 = arith.addf %87, %88 : vector<8x128xf32>
    %cst_34 = arith.constant 0.000000e+00 : f32
    %90 = vector.broadcast %cst_34 : f32 to vector<8x128xf32>
    %91 = arith.maximumf %89, %90 : vector<8x128xf32>
    %c312 = arith.constant 312 : index
    %c0_35 = arith.constant 0 : index
    %92 = vector.load %arg2[%c312, %c0_35] : memref<448x128xf32, #tpu.memory_space<vmem>>, vector<128x128xf32>
    %cst_36 = arith.constant dense<0.000000e+00> : vector<8x128xf32>
    %93 = tpu.matmul %91, %92, %cst_36 {dimension_numbers = #tpu.dot_dimension_numbers<[1], [0], [0], [1], [0, 0, 1, 1], [], []>} : vector<8x128xf32>, vector<128x128xf32>, vector<8x128xf32> -> vector<8x128xf32>
    %c440 = arith.constant 440 : index
    %c0_37 = arith.constant 0 : index
    %94 = vector.load %arg2[%c440, %c0_37] : memref<448x128xf32, #tpu.memory_space<vmem>>, vector<1x128xf32>
    %95 = vector.broadcast %94 : vector<1x128xf32> to vector<8x128xf32>
    %96 = arith.addf %93, %95 : vector<8x128xf32>
    %c0_38 = arith.constant 0 : index
    %c0_39 = arith.constant 0 : index
    %97 = vector.load %arg3[%c0_38, %c0_39] : memref<8x256xf32, #tpu.memory_space<vmem>>, vector<8x128xf32>
    tpu.vector_store %arg3[%c0_38, %c0_39], %96 {strides = array<i32>} : memref<8x256xf32, #tpu.memory_space<vmem>>, vector<8x128xf32>,
    return
  }
  func.func @transform_0(%arg0: i32) -> (i32, i32) {
    %c0_i32 = arith.constant 0 : i32
    %c0_i32_0 = arith.constant 0 : i32
    return %arg0, %c0_i32 : i32, i32
  }
  func.func @transform_1(%arg0: i32) -> (i32, i32) {
    %c0_i32 = arith.constant 0 : i32
    %c0_i32_0 = arith.constant 0 : i32
    %c0_i32_1 = arith.constant 0 : i32
    return %c0_i32, %c0_i32_0 : i32, i32
  }
  func.func @transform_2(%arg0: i32) -> (i32, i32) {
    %c0_i32 = arith.constant 0 : i32
    %c0_i32_0 = arith.constant 0 : i32
    return %arg0, %c0_i32 : i32, i32
  }
}

</mosaic_0001>

<bundles_post_ra>
// kernel: _lambda_.1
= control target key start
LH: loop header
LB: loop body
LE: loop exit
PB: predicated region body
PF: predicated region fallthrough
CT: control target
= control target key end

     0   :  { %7 = vsyncpa [#allocation3], 0  ;;  %s924_s0 = inlined_call_operand.hbm [shape: f32[8,32], index: 0, kind: input, shape index: {}]   ;;  %s925_s1 = inlined_call_operand.hbm [shape: f32[448,128], index: 1, kind: input, shape index: {}]   ;;  %s926_s2 = inlined_call_operand.vmem [shape: f32[8,256], index: 2, kind: output, shape index: {}]  }
   0x1   :  { %8 = vsyncpa [#allocation5], 0  ;;  %s823_s9 = smov [#allocation2]   ;;  %s824_s11 = smov [#allocation4]  }
   0x2   :  { %s15_s10 = sshll.u32 %s823_s9, 4  ;;  %s24_s12 = sshll.u32 %s824_s11, 4  ;;  %s16_s10 = int_to_ptr.vmem [resolvable:$true] %s15_s10  ;;  %s845_s12 = int_to_ptr.vmem [resolvable:$true] %s24_s12 }
   0x3   :  { %s775_s15 = scalar_lea.hbm %s924_s0, 128 }
   0x4   :  { %p776_p0 = scmp.ne.s32.totalorder %s924_s0, %s775_s15  ;;  %p779_p1 = scmp.lt.u32.totalorder %s775_s15, %s924_s0 }
   0x6   :  { %p781_p2 = pnand %p779_p1, %p776_p0 }
   0x8   :  { %784 = shalt.err (!%p781_p2)
}
   0x9   :  { %s785_s20 = scalar_lea.vmem %s16_s10, 128  ;;  %p790_p4 = scmp.lt.s32.totalorder %s16_s10, %s16_s10 }
   0xa   :  { %p786_p3 = scmp.ne.s32.totalorder %s16_s10, %s785_s20  ;;  %p791_p5 = scmp.lt.s32.totalorder %s785_s20, %s785_s20 }
   0xc   :  { %p792_p6 = por %p791_p5, %p790_p4 }
   0xe   :  { %p793_p7 = pnand %p792_p6, %p786_p3 }
  0x10   :  { %796 = shalt.err (!%p793_p7)
}
  0x11   :  { %18 = dma.hbm_to_vmem [thread:$0]  %s924_s0, 128, %s16_s10, [#allocation3]  }
  0x12   :  { %s797_s25 = scalar_lea.hbm %s925_s1, 7168 }
  0x13   :  { %p798_p8 = scmp.ne.s32.totalorder %s925_s1, %s797_s25  ;;  %p801_p9 = scmp.lt.u32.totalorder %s797_s25, %s925_s1 }
  0x15   :  { %p803_p10 = pnand %p801_p9, %p798_p8 }
  0x17   :  { %806 = shalt.err (!%p803_p10)
}
  0x18   :  { %s807_s30 = scalar_lea.vmem %s845_s12, 7168  ;;  %p812_p12 = scmp.lt.s32.totalorder %s845_s12, %s845_s12 }
  0x19   :  { %p808_p11 = scmp.ne.s32.totalorder %s845_s12, %s807_s30  ;;  %p813_p13 = scmp.lt.s32.totalorder %s807_s30, %s807_s30 }
  0x1b   :  { %p814_p0 = por %p813_p13, %p812_p12 }
  0x1d   :  { %p815_p1 = pnand %p814_p0, %p808_p11 }
  0x1f   :  { %818 = shalt.err (!%p815_p1)
}
  0x20   :  { %s825_s0 = smov 128   ;;  %s826_s3 = smov 8  }
  0x21   :  { %30 = dma.hbm_to_vmem [thread:$0]  %s925_s1, 7168, %s845_s12, [#allocation5], %s825_s0, %s825_s0, %s826_s3  }
  0x22   :  { %819 = dma.done.wait [#allocation3], 128  }
  0x23   :  { %820 = vsyncadd [#allocation3], 4294967168 }
  0x24   :  { %821 = dma.done.wait [#allocation5], 7168  }
  0x25   :  { %822 = vsyncadd [#allocation5], 4294960128  ;;  %v827_v0 = vmov 0.0|0.0   ;;  %vm828_vm0 = vmmov 0   ;;  %v829_v1 = vmov 0.0   ;;  %v38_v2 = vld [vmem:[#allocation4] sm:$0xff]  ;;  %v145_v55 = vlaneseq }
  0x26   :  { %684 = vmatprep.subr.bf16.mxu0 %v827_v0  ;;  %576 = vmatprep.mubr.msk.f32.mxu0 %vm828_vm0, %v829_v1  ;;  %v39_v3 = vld [vmem:[#allocation4 + $0x8] sm:$0xff]  ;;  %v40_v4 = vld [vmem:[#allocation4 + $0x10] sm:$0xff]  ;;  %v41_v6 = vld [vmem:[#allocation4 + $0x18] sm:$0xff]  ;;  %vm49_vm1 = vcmask 261120  }
  0x27   :  { %690 = vmatprep.subr.bf16.mxu1 %v827_v0  ;;  %611 = vmatprep.mubr.msk.f32.mxu1 %vm828_vm0, %v829_v1  ;;  %v685_v5 = vpack.c.bf16 %v39_v3, %v38_v2  ;;  %v688_v7 = vpack.c.bf16 %v41_v6, %v40_v4  ;;  %v37_v8 = vld [vmem:[#allocation2] sm:$0xff]  ;;  %v156_v9 = vld [vmem:[#allocation4 + $0x28] sm:$0xff]  ;;  %v157_v10 = vld [vmem:[#allocation4 + $0x30] sm:$0xff]  ;;  %v146_v56 = vshrl.u32 %v145_v55, 7 }
  0x28   :  { %v691_v11 = vpack.c.bf16 %v157_v10, %v156_v9  ;;  %v158_v12 = vld [vmem:[#allocation4 + $0x38] sm:$0xff]  ;;  %v159_v13 = vld [vmem:[#allocation4 + $0x40] sm:$0xff]  ;;  %v160_v15 = vld [vmem:[#allocation4 + $0x48] sm:$0xff] }
  0x29   :  { %686 = vmatpush3.bf16.msra.mxu0 %v685_v5  ;;  %v694_v14 = vpack.c.bf16 %v159_v13, %v158_v12  ;;  %v161_v16 = vld [vmem:[#allocation4 + $0x50] sm:$0xff]  ;;  %v162_v18 = vld [vmem:[#allocation4 + $0x58] sm:$0xff]  ;;  %v163_v19 = vld [vmem:[#allocation4 + $0x60] sm:$0xff]  ;;  %v894_v58 = vsub.s32 0, %v146_v56 }
  0x2a   :  { %687 = vmatprep.subr.bf16.mxu0 %v827_v0  ;;  %692 = vmatpush3.bf16.msra.mxu1 %v691_v11  ;;  %v697_v17 = vpack.c.bf16 %v161_v16, %v160_v15  ;;  %v700_v20 = vpack.c.bf16 %v163_v19, %v162_v18  ;;  %v164_v21 = vld [vmem:[#allocation4 + $0x68] sm:$0xff]  ;;  %v165_v22 = vld [vmem:[#allocation4 + $0x70] sm:$0xff]  ;;  %v166_v24 = vld [vmem:[#allocation4 + $0x78] sm:$0xff] }
  0x2b   :  { %693 = vmatprep.subr.bf16.mxu1 %v827_v0  ;;  %v703_v23 = vpack.c.bf16 %v165_v22, %v164_v21  ;;  %v167_v25 = vld [vmem:[#allocation4 + $0x80] sm:$0xff]  ;;  %v168_v27 = vld [vmem:[#allocation4 + $0x88] sm:$0xff]  ;;  %v169_v28 = vld [vmem:[#allocation4 + $0x90] sm:$0xff] }
  0x2c   :  { %v706_v26 = vpack.c.bf16 %v167_v25, %v166_v24  ;;  %v709_v29 = vpack.c.bf16 %v169_v28, %v168_v27  ;;  %v170_v30 = vld [vmem:[#allocation4 + $0x98] sm:$0xff]  ;;  %v171_v31 = vld [vmem:[#allocation4 + $0xa0] sm:$0xff]  ;;  %v286_v11 = vld [vmem:[#allocation4 + $0xc8] sm:$0xff] }
  0x2d   :  { %689 = vmatpush3.bf16.msra.mxu0 %v688_v7  ;;  %v712_v32 = vpack.c.bf16 %v171_v31, %v170_v30  ;;  %v507_v33 = vld [vmem:[#allocation4 + $0x20] ss:$0 sm:$0xff]  ;;  %v43_v57 = vld [vmem:[#allocation4 + $0x21] sm:$0x1]  ;;  %v44_v61 = vld [vmem:[#allocation4 + $0x22] sm:$0x1] }
  0x2e   :  { %714 = vmatprep.subr.bf16.mxu0 %v827_v0  ;;  %695 = vmatpush3.bf16.msra.mxu1 %v694_v14  ;;  %v283_v7 = vld [vmem:[#allocation4 + $0xb0] sm:$0xff]  ;;  %v285_v10 = vld [vmem:[#allocation4 + $0xc0] sm:$0xff]  ;;  %v288_v14 = vld [vmem:[#allocation4 + $0xd8] sm:$0xff] }
  0x2f   :  { %696 = vmatprep.subr.bf16.mxu1 %v827_v0  ;;  %v718_v12 = vpack.c.bf16 %v286_v11, %v285_v10  ;;  %v287_v13 = vld [vmem:[#allocation4 + $0xd0] sm:$0xff]  ;;  %v289_v16 = vld [vmem:[#allocation4 + $0xe0] sm:$0xff]  ;;  %v292_v19 = vld [vmem:[#allocation4 + $0xf8] sm:$0xff] }
  0x30   :  { %577 = vmatmul.mubr.msk.f32.vlgmr.msra.gmra.mrb[0].mxu0 %vm49_vm1, %v37_v8  ;;  %v284_v8 = vld [vmem:[#allocation4 + $0xb8] sm:$0xff]  ;;  %v721_v15 = vpack.c.bf16 %v288_v14, %v287_v13  ;;  %v291_v18 = vld [vmem:[#allocation4 + $0xf0] sm:$0xff]  ;;  %v293_v21 = vld [vmem:[#allocation4 + $0x100] sm:$0xff] }
  0x31   :  { %646 = vmatprep.mubr.msk.f32.mxu0 %vm828_vm0, %v829_v1  ;;  %v715_v9 = vpack.c.bf16 %v284_v8, %v283_v7  ;;  %v294_v22 = vld [vmem:[#allocation4 + $0x108] sm:$0xff]  ;;  %v295_v24 = vld [vmem:[#allocation4 + $0x110] sm:$0xff]  ;;  %v296_v25 = vld [vmem:[#allocation4 + $0x118] sm:$0xff] }
  0x32   :  { %698 = vmatpush3.bf16.msra.mxu1 %v697_v17  ;;  %v297_v27 = vld [vmem:[#allocation4 + $0x120] sm:$0xff]  ;;  %v298_v28 = vld [vmem:[#allocation4 + $0x128] sm:$0xff]  ;;  %v413_v8 = vld [vmem:[#allocation4 + $0x158] sm:$0xff] }
  0x33   :  { %699 = vmatprep.subr.bf16.mxu1 %v827_v0  ;;  %716 = vmatpush3.bf16.msra.mxu0 %v715_v9  ;;  %v509_v30 = vld [vmem:[#allocation4 + $0xa8] ss:$0 sm:$0xff]  ;;  %v174_v55 = vld [vmem:[#allocation4 + $0xaa] sm:$0x1]  ;;  %v414_v9 = vld [vmem:[#allocation4 + $0x160] sm:$0xff] }
  0x34   :  { %717 = vmatprep.subr.bf16.mxu0 %v827_v0  ;;  %v745_v10 = vpack.c.bf16 %v414_v9, %v413_v8  ;;  %v415_v11 = vld [vmem:[#allocation4 + $0x168] sm:$0xff]  ;;  %v417_v14 = vld [vmem:[#allocation4 + $0x178] sm:$0xff] }
  0x36   :  { %701 = vmatpush3.bf16.msra.mxu1 %v700_v20  ;;  %v727_v20 = vpack.c.bf16 %v292_v19, %v291_v18  ;;  %v421_v19 = vld [vmem:[#allocation4 + $0x198] sm:$0xff] }
  0x37   :  { %702 = vmatprep.subr.bf16.mxu1 %v827_v0  ;;  %719 = vmatpush3.bf16.msra.mxu0 %v718_v12  ;;  %v416_v12 = vld [vmem:[#allocation4 + $0x170] sm:$0xff] }
  0x38   :  { %720 = vmatprep.subr.bf16.mxu0 %v827_v0  ;;  %v748_v13 = vpack.c.bf16 %v416_v12, %v415_v11 }
  0x3a   :  { %704 = vmatpush3.bf16.msra.mxu1 %v703_v23  ;;  %v730_v23 = vpack.c.bf16 %v294_v22, %v293_v21  ;;  %v423_v22 = vld [vmem:[#allocation4 + $0x1a8] sm:$0xff] }
  0x3b   :  { %705 = vmatprep.subr.bf16.mxu1 %v827_v0  ;;  %722 = vmatpush3.bf16.msra.mxu0 %v721_v15  ;;  %v418_v15 = vld [vmem:[#allocation4 + $0x180] sm:$0xff] }
  0x3c   :  { %723 = vmatprep.subr.bf16.mxu0 %v827_v0 }
  0x3e   :  { %707 = vmatpush3.bf16.msra.mxu1 %v706_v26  ;;  %v733_v26 = vpack.c.bf16 %v296_v25, %v295_v24  ;;  %v510_v25 = vld [vmem:[#allocation4 + $0x130] ss:$0 sm:$0xff] }
  0x3f   :  { %708 = vmatprep.subr.bf16.mxu1 %v827_v0 }
  0x42   :  { %710 = vmatpush3.bf16.msra.mxu1 %v709_v29  ;;  %v736_v29 = vpack.c.bf16 %v298_v28, %v297_v27 }
  0x43   :  { %711 = vmatprep.subr.bf16.mxu1 %v827_v0 }
  0x46   :  { %713 = vmatpush3.bf16.msra.mxu1 %v712_v32 }
  0x47   :  { %738 = vmatprep.subr.bf16.mxu1 %v827_v0 }
 0x103   :  { %v119_v34 = vpop.f32.mrb[0].mxu0 }
 0x104   :  { %v120_v35 = vadd.f32 %v507_v33, %v119_v34  ;;  %v578_v36 = vpop.f32.mrb[1].mxu0 }
 0x106   :  { %v123_v37 = vrot.slane %v120_v35, 4  ;;  %v129_v38 = vmul.f32 %v120_v35, %v120_v35 }
 0x108   :  { %v124_v39 = vadd.f32 %v123_v37, %v120_v35  ;;  %v130_v40 = vrot.slane %v129_v38, 4 }
 0x10a   :  { %v125_v41 = vrot.slane %v124_v39, 2  ;;  %v131_v42 = vadd.f32 %v130_v40, %v129_v38 }
 0x10c   :  { %v126_v43 = vadd.f32 %v125_v41, %v124_v39  ;;  %v132_v44 = vrot.slane %v131_v42, 2 }
 0x10e   :  { %v127_v45 = vrot.slane %v126_v43, 1  ;;  %v133_v46 = vadd.f32 %v132_v44, %v131_v42 }
 0x110   :  { %v128_v47 = vadd.f32 %v127_v45, %v126_v43  ;;  %v134_v48 = vrot.slane %v133_v46, 1 }
 0x112   :  { %v135_v49 = vadd.f32 %v134_v48, %v133_v46  ;;  %v136_v50 = vmul.f32 0.125, %v128_v47 }
 0x114   :  { %v137_v51 = vmul.f32 0.125, %v135_v49  ;;  %v138_v52 = vmul.f32 %v136_v50, %v136_v50 }
 0x116   :  { %v139_v53 = vsub.f32 %v137_v51, %v138_v52  ;;  %v173_v52 = vld [vmem:[#allocation4 + $0xa9] sm:$0x1] }
 0x118   :  { %v140_v54 = vadd.f32 1e-05, %v139_v53 }
 0x11a   :  { %769 = vrsqrt.f32 %v140_v54 }
 0x124   :  { %v770_v59 = vpop.eup %769 }
 0x125   :  { %v142_v60 = vmul.f32 %v770_v59, %v43_v57 }
 0x127   :  { %v143_v62 = vmul.f32 %v142_v60, %v136_v50  ;;  %v148_v63 = vrot.slane %v142_v60, %v894_v58 }
 0x129   :  { %v144_v2 = vsub.f32 %v44_v61, %v143_v62  ;;  %v149_v3 = vmul.f32 %v148_v63, %v120_v35 }
 0x12b   :  { %v153_v4 = vrot.slane %v144_v2, %v894_v58  ;;  %v409_v2 = vld [vmem:[#allocation4 + $0x138] sm:$0xff] }
 0x12d   :  { %v154_v5 = vadd.f32 %v153_v4, %v149_v3  ;;  %v410_v3 = vld [vmem:[#allocation4 + $0x140] sm:$0xff] }
 0x12e   :  { %v739_v4 = vpack.c.bf16 %v410_v3, %v409_v2 }
 0x12f   :  { %v155_v6 = vmax.f32 %v154_v5, 0.0  ;;  %v411_v5 = vld [vmem:[#allocation4 + $0x148] sm:$0xff] }
 0x131   :  { %612 = vmatmul.mubr.f32.vlgmr.msra.gmra.mrb[0].mxu1 %v155_v6  ;;  %v412_v6 = vld [vmem:[#allocation4 + $0x150] sm:$0xff] }
 0x132   :  { %681 = vmatprep.mubr.msk.f32.mxu1 %vm828_vm0, %v829_v1  ;;  %v290_v1 = vld [vmem:[#allocation4 + $0xe8] sm:$0xff]  ;;  %740 = vmatpush3.bf16.msra.mxu1 %v739_v4  ;;  %v742_v7 = vpack.c.bf16 %v412_v6, %v411_v5 }
 0x133   :  { %v724_v17 = vpack.c.bf16 %v290_v1, %v289_v16  ;;  %741 = vmatprep.subr.bf16.mxu1 %v827_v0  ;;  %v751_v16 = vpack.c.bf16 %v418_v15, %v417_v14  ;;  %v419_v1 = vld [vmem:[#allocation4 + $0x188] sm:$0xff] }
 0x135   :  { %725 = vmatpush3.bf16.msra.mxu0 %v724_v17  ;;  %v420_v17 = vld [vmem:[#allocation4 + $0x190] sm:$0xff] }
 0x136   :  { %726 = vmatprep.subr.bf16.mxu0 %v827_v0  ;;  %743 = vmatpush3.bf16.msra.mxu1 %v742_v7  ;;  %v754_v18 = vpack.c.bf16 %v420_v17, %v419_v1 }
 0x137   :  { %744 = vmatprep.subr.bf16.mxu1 %v827_v0 }
 0x139   :  { %728 = vmatpush3.bf16.msra.mxu0 %v727_v20  ;;  %v422_v20 = vld [vmem:[#allocation4 + $0x1a0] sm:$0xff] }
 0x13a   :  { %729 = vmatprep.subr.bf16.mxu0 %v827_v0  ;;  %746 = vmatpush3.bf16.msra.mxu1 %v745_v10  ;;  %v757_v21 = vpack.c.bf16 %v422_v20, %v421_v19 }
 0x13b   :  { %747 = vmatprep.subr.bf16.mxu1 %v827_v0 }
 0x13d   :  { %731 = vmatpush3.bf16.msra.mxu0 %v730_v23  ;;  %v424_v23 = vld [vmem:[#allocation4 + $0x1b0] sm:$0xff] }
 0x13e   :  { %732 = vmatprep.subr.bf16.mxu0 %v827_v0  ;;  %749 = vmatpush3.bf16.msra.mxu1 %v748_v13  ;;  %v760_v24 = vpack.c.bf16 %v424_v23, %v423_v22 }
 0x13f   :  { %750 = vmatprep.subr.bf16.mxu1 %v827_v0 }
 0x141   :  { %734 = vmatpush3.bf16.msra.mxu0 %v733_v26 }
 0x142   :  { %735 = vmatprep.subr.bf16.mxu0 %v827_v0  ;;  %752 = vmatpush3.bf16.msra.mxu1 %v751_v16 }
 0x143   :  { %753 = vmatprep.subr.bf16.mxu1 %v827_v0 }
 0x145   :  { %737 = vmatpush3.bf16.msra.mxu0 %v736_v29 }
 0x146   :  { %755 = vmatpush3.bf16.msra.mxu1 %v754_v18 }
 0x147   :  { %756 = vmatprep.subr.bf16.mxu1 %v827_v0 }
 0x14a   :  { %758 = vmatpush3.bf16.msra.mxu1 %v757_v21 }
 0x14b   :  { %759 = vmatprep.subr.bf16.mxu1 %v827_v0 }
 0x14e   :  { %761 = vmatpush3.bf16.msra.mxu1 %v760_v24 }
 0x204   :  { %v245_v31 = vpop.f32.mrb[0].mxu1 }
 0x205   :  { %v246_v32 = vadd.f32 %v509_v30, %v245_v31  ;;  %v613_v33 = vpop.f32.mrb[1].mxu1 }
 0x207   :  { %v249_v34 = vrot.slane %v246_v32, 4  ;;  %v255_v35 = vmul.f32 %v246_v32, %v246_v32 }
 0x209   :  { %v250_v36 = vadd.f32 %v249_v34, %v246_v32  ;;  %v256_v37 = vrot.slane %v255_v35, 4 }
 0x20b   :  { %v251_v38 = vrot.slane %v250_v36, 2  ;;  %v257_v39 = vadd.f32 %v256_v37, %v255_v35 }
 0x20d   :  { %v252_v40 = vadd.f32 %v251_v38, %v250_v36  ;;  %v258_v41 = vrot.slane %v257_v39, 2 }
 0x20f   :  { %v253_v42 = vrot.slane %v252_v40, 1  ;;  %v259_v43 = vadd.f32 %v258_v41, %v257_v39 }
 0x211   :  { %v254_v44 = vadd.f32 %v253_v42, %v252_v40  ;;  %v260_v45 = vrot.slane %v259_v43, 1 }
 0x213   :  { %v261_v46 = vadd.f32 %v260_v45, %v259_v43  ;;  %v262_v47 = vmul.f32 0.125, %v254_v44 }
 0x215   :  { %v263_v48 = vmul.f32 0.125, %v261_v46  ;;  %v264_v49 = vmul.f32 %v262_v47, %v262_v47  ;;  %v300_v46 = vld [vmem:[#allocation4 + $0x131] sm:$0x1] }
 0x217   :  { %v265_v50 = vsub.f32 %v263_v48, %v264_v49  ;;  %v301_v49 = vld [vmem:[#allocation4 + $0x132] sm:$0x1] }
 0x219   :  { %v266_v51 = vadd.f32 1e-05, %v265_v50 }
 0x21b   :  { %771 = vrsqrt.f32 %v266_v51 }
 0x225   :  { %v772_v53 = vpop.eup %771 }
 0x226   :  { %v268_v54 = vmul.f32 %v772_v53, %v173_v52 }
 0x228   :  { %v274_v56 = vrot.slane %v268_v54, %v894_v58  ;;  %v269_v57 = vmul.f32 %v268_v54, %v262_v47 }
 0x22a   :  { %v270_v59 = vsub.f32 %v174_v55, %v269_v57  ;;  %v275_v60 = vmul.f32 %v274_v56, %v246_v32  ;;  %v511_v57 = vld [vmem:[#allocation4 + $0x1b8] ss:$0 sm:$0xff] }
 0x22c   :  { %v279_v61 = vrot.slane %v270_v59, %v894_v58 }
 0x22e   :  { %v280_v62 = vadd.f32 %v279_v61, %v275_v60 }
 0x230   :  { %v281_v63 = vmax.f32 %v280_v62, 0.0 }
 0x232   :  { %282 = vst [vmem:[%s926_s2 + $0x8] sm:$0xff] %v281_v63  ;;  %647 = vmatmul.mubr.f32.vlgmr.msra.gmra.mrb[2].mxu0 %v281_v63 }
 0x305   :  { %v372_v26 = vpop.f32.mrb[2].mxu0 }
 0x306   :  { %v373_v27 = vadd.f32 %v510_v25, %v372_v26  ;;  %v648_v28 = vpop.f32.mrb[3].mxu0 }
 0x308   :  { %v376_v29 = vrot.slane %v373_v27, 4  ;;  %v382_v30 = vmul.f32 %v373_v27, %v373_v27 }
 0x30a   :  { %v377_v31 = vadd.f32 %v376_v29, %v373_v27  ;;  %v383_v32 = vrot.slane %v382_v30, 4 }
 0x30c   :  { %v378_v33 = vrot.slane %v377_v31, 2  ;;  %v384_v34 = vadd.f32 %v383_v32, %v382_v30 }
 0x30e   :  { %v379_v35 = vadd.f32 %v378_v33, %v377_v31  ;;  %v385_v36 = vrot.slane %v384_v34, 2 }
 0x310   :  { %v380_v37 = vrot.slane %v379_v35, 1  ;;  %v386_v38 = vadd.f32 %v385_v36, %v384_v34 }
 0x312   :  { %v381_v39 = vadd.f32 %v380_v37, %v379_v35  ;;  %v387_v40 = vrot.slane %v386_v38, 1 }
 0x314   :  { %v388_v41 = vadd.f32 %v387_v40, %v386_v38  ;;  %v389_v42 = vmul.f32 0.125, %v381_v39 }
 0x316   :  { %v390_v0 = vmul.f32 0.125, %v388_v41  ;;  %v391_v43 = vmul.f32 %v389_v42, %v389_v42 }
 0x318   :  { %v392_v44 = vsub.f32 %v390_v0, %v391_v43 }
 0x31a   :  { %v393_v45 = vadd.f32 1e-05, %v392_v44 }
 0x31c   :  { %773 = vrsqrt.f32 %v393_v45 }
 0x326   :  { %v774_v47 = vpop.eup %773 }
 0x327   :  { %v395_v48 = vmul.f32 %v774_v47, %v300_v46 }
 0x329   :  { %v401_v50 = vrot.slane %v395_v48, %v894_v58  ;;  %v396_v51 = vmul.f32 %v395_v48, %v389_v42 }
 0x32b   :  { %v397_v52 = vsub.f32 %v301_v49, %v396_v51  ;;  %v402_v53 = vmul.f32 %v401_v50, %v373_v27 }
 0x32d   :  { %v406_v54 = vrot.slane %v397_v52, %v894_v58 }
 0x32f   :  { %v407_v55 = vadd.f32 %v406_v54, %v402_v53 }
 0x331   :  { %v408_v56 = vmax.f32 %v407_v55, 0.0 }
 0x333   :  { %682 = vmatmul.mubr.f32.vlgmr.msra.gmra.mrb[2].mxu1 %v408_v56 }
 0x406   :  { %v496_v59 = vpop.f32.mrb[2].mxu1 }
 0x407   :  { %v497_v60 = vadd.f32 %v511_v57, %v496_v59  ;;  %v683_v61 = vpop.f32.mrb[3].mxu1 }
 0x409   :  { %500 = vst [vmem:[%s926_s2] sm:$0xff] %v497_v60 }
 0x40a   :  { %505 = vsyncpa [#allocation3], 1 }
 0x40b   :  { %506 = vsyncpa [#allocation5], 1 }

</bundles_post_ra>
